<compile_context>
chip_gen: v6e
topology: v6e:2x2x1
jax: 0.10.0
libtpu: 0.0.40
codegen_flags: <defaults>
</compile_context>

<pallas_src>
import functools
import math

import jax
import jax.numpy as jnp
from jax.experimental import pallas as pl
from jax.experimental.pallas import tpu as pltpu


_TILE_BUDGET_BYTES = 4 * 1024 * 1024  # per tile (input tile == output tile size)


def _lcm(a, b):
    return a * b // math.gcd(a, b)


def _choose_h_tile(C, H, W, itemsize):
    """Largest H-tile whose (C, TH, W) slab fits the per-tile budget and
    satisfies the BlockSpec divisibility rules (TH % 8 == 0 and
    (TH * W) % 128 == 0), falling back to the full H when everything fits or
    no legal split exists."""
    if C * H * W * itemsize <= _TILE_BUDGET_BYTES:
        return H
    step = _lcm(8, 128 // math.gcd(128, W))
    if step >= H:
        return H
    max_rows = max(1, _TILE_BUDGET_BYTES // (C * W * itemsize))
    th = max(step, (max_rows // step) * step)
    return min(th, H)


# ---------------------------------------------------------------------------
# Fast path: NCHW -> NHWC
# ---------------------------------------------------------------------------

def _nchw_to_nhwc_kernel(x_ref, o_ref, *, C, TH, W):
    x = x_ref[...]                                      # (C, TH*W) lane-dense load
    y = jnp.transpose(x.reshape(C, TH, W), (1, 2, 0))   # (TH, W, C) XLU relayout
    o_ref[...] = y.reshape(TH, W * C)                   # lane-dense store


def _pallas_permute_nchw_to_nhwc(x):
    B, C, H, W = x.shape
    itemsize = jnp.dtype(x.dtype).itemsize
    TH = _choose_h_tile(C, H, W, itemsize)
    n_h = pl.cdiv(H, TH)
    tile_bytes = C * TH * W * itemsize
    # double-buffered input + output tiles, plus headroom; stay well inside
    # v7x's 64 MiB physical VMEM.
    vmem_limit = int(min(64 << 20, max(16 << 20, 4 * tile_bytes + (4 << 20))))

    x_flat = x.reshape(B, C, H * W)  # free view of contiguous NCHW data
    kernel = functools.partial(_nchw_to_nhwc_kernel, C=C, TH=TH, W=W)

    out_flat = pl.pallas_call(
        kernel,
        out_shape=jax.ShapeDtypeStruct((B, H, W * C), x.dtype),
        grid_spec=pltpu.PrefetchScalarGridSpec(
            num_scalar_prefetch=0,
            grid=(B, n_h),
            in_specs=[pl.BlockSpec((None, C, TH * W), lambda b, h: (b, 0, h))],
            out_specs=pl.BlockSpec((None, TH, W * C), lambda b, h: (b, h, 0)),
        ),
        compiler_params=pltpu.CompilerParams(
            dimension_semantics=("parallel", "parallel"),
            vmem_limit_bytes=vmem_limit,
        ),
        cost_estimate=pl.CostEstimate(
            flops=0,
            transcendentals=0,
            bytes_accessed=2 * x.size * itemsize,
        ),
    )(x_flat)
    return out_flat.reshape(B, H, W, C)


# ---------------------------------------------------------------------------
# Generic path: arbitrary permutation
# ---------------------------------------------------------------------------

def _generic_permute_kernel(x_ref, o_ref, *, perm):
    o_ref[...] = jnp.transpose(x_ref[...], perm)


def _pallas_permute_generic(x, perm):
    ndim = x.ndim
    in_shape = x.shape
    out_shape = tuple(in_shape[p] for p in perm)
    itemsize = jnp.dtype(x.dtype).itemsize
    kernel = functools.partial(_generic_permute_kernel, perm=perm)
    cost = pl.CostEstimate(flops=0, transcendentals=0,
                           bytes_accessed=2 * x.size * itemsize)

    out_axis_of_in0 = perm.index(0)
    # Only grid over the leading input axis if the size-1 block dim it creates
    # on the output does NOT land in the output's last two dims (the
    # (8,128)/full-dim BlockSpec rule).
    batch_grid_ok = ndim >= 3 and out_axis_of_in0 <= ndim - 3

    if batch_grid_ok:
        B = in_shape[0]
        in_block = (1,) + tuple(in_shape[1:])
        out_block = tuple(1 if p == 0 else in_shape[p] for p in perm)

        def in_index_map(b):
            return (b,) + (0,) * (ndim - 1)

        def out_index_map(b):
            return tuple(b if i == out_axis_of_in0 else 0 for i in range(ndim))

        grid = (B,)
        in_spec = pl.BlockSpec(in_block, in_index_map)
        out_spec = pl.BlockSpec(out_block, out_index_map)
        semantics = ("parallel",)
    else:
        grid = (1,)
        in_spec = pl.BlockSpec(in_shape, lambda i: (0,) * ndim)
        out_spec = pl.BlockSpec(out_shape, lambda i: (0,) * ndim)
        semantics = ("arbitrary",)

    return pl.pallas_call(
        kernel,
        out_shape=jax.ShapeDtypeStruct(out_shape, x.dtype),
        grid_spec=pltpu.PrefetchScalarGridSpec(
            num_scalar_prefetch=0,
            grid=grid,
            in_specs=[in_spec],
            out_specs=out_spec,
        ),
        compiler_params=pltpu.CompilerParams(dimension_semantics=semantics),
        cost_estimate=cost,
    )(x)


# ---------------------------------------------------------------------------
# Public wrapper / module
# ---------------------------------------------------------------------------

def pallas_permute(x, perm):
    """Equivalent of torch.Tensor.permute(*perm) for an N-D array."""
    perm = tuple(int(p) for p in perm)
    ndim = x.ndim
    assert sorted(perm) == list(range(ndim)), f"bad perm {perm} for ndim {ndim}"
    if perm == tuple(range(ndim)):
        return x
    if ndim == 4 and perm == (0, 2, 3, 1):
        return _pallas_permute_nchw_to_nhwc(x)
    return _pallas_permute_generic(x, perm)


class Permute:
    """Mirror of the PyTorch nn.Module: holds the permutation args."""

    def __init__(self, *args):
        self.args = args

    def __call__(self, x):
        return pallas_permute(x, self.args)


if __name__ == "__main__":
    key = jax.random.PRNGKey(0)
    # Small NCHW input consistent with the module's typical use in VMamba.
    B, C, H, W = 2, 4, 16, 16
    x = jax.random.normal(key, (B, C, H, W), dtype=jnp.float32)

    # Fast lane-dense path: NCHW -> NHWC (the VMamba hot case).
    out = Permute(0, 2, 3, 1)(x)
    out = jax.block_until_ready(out)
    ref = jnp.transpose(x, (0, 2, 3, 1))
    assert out.shape == (B, H, W, C), out.shape
    assert out.dtype == x.dtype
    assert bool(jnp.array_equal(out, ref))

    # Generic path: NHWC -> NCHW (round trip through the other VMamba perm).
    back = Permute(0, 3, 1, 2)(out)
    back = jax.block_until_ready(back)
    assert back.shape == (B, C, H, W), back.shape
    assert bool(jnp.array_equal(back, x))

    print("KERNEL_OK")
</pallas_src>

<mosaic_0001>
module attributes {stable_mosaic.version = 11 : i64} {
  func.func @_nchw_to_nhwc_kernel(%arg0: i32, %arg1: i32, %arg2: memref<1x4x256xf32, #tpu.memory_space<vmem>>, %arg3: memref<1x16x64xf32, #tpu.memory_space<vmem>>) attributes {dimension_semantics = [#tpu.dimension_semantics<parallel>, #tpu.dimension_semantics<parallel>], iteration_bounds = array<i64: 2, 1>, scalar_prefetch = 0 : i64, scratch_operands = 0 : i64, tpu.core_type = #tpu.core_type<tc>, window_params = [{transform_indices = @transform_0, window_bounds = array<i64: 1, 4, 256>}, {transform_indices = @transform_1, window_bounds = array<i64: 1, 16, 64>}]} {
    %c0 = arith.constant 0 : index
    %c0_0 = arith.constant 0 : index
    %c0_1 = arith.constant 0 : index
    %0 = vector.load %arg2[%c0, %c0_0, %c0_1] : memref<1x4x256xf32, #tpu.memory_space<vmem>>, vector<1x4x256xf32>
    %1 = vector.shape_cast %0 : vector<1x4x256xf32> to vector<4x256xf32>
    %2 = vector.shape_cast %1 : vector<4x256xf32> to vector<4x16x16xf32>
    %3 = tpu.transpose %2, [1, 2, 0] : vector<4x16x16xf32> -> vector<16x16x4xf32>
    %4 = vector.shape_cast %3 : vector<16x16x4xf32> to vector<16x64xf32>
    %c0_2 = arith.constant 0 : index
    %c0_3 = arith.constant 0 : index
    %c0_4 = arith.constant 0 : index
    %5 = vector.load %arg3[%c0_2, %c0_3, %c0_4] : memref<1x16x64xf32, #tpu.memory_space<vmem>>, vector<1x16x64xf32>
    %6 = vector.shape_cast %5 : vector<1x16x64xf32> to vector<16x64xf32>
    %7 = vector.shape_cast %4 : vector<16x64xf32> to vector<1x16x64xf32>
    tpu.vector_store %arg3[%c0_2, %c0_3, %c0_4], %7 {strides = array<i32>} : memref<1x16x64xf32, #tpu.memory_space<vmem>>, vector<1x16x64xf32>,
    return
  }
  func.func @transform_0(%arg0: i32, %arg1: i32) -> (i32, i32, i32) {
    %c0_i32 = arith.constant 0 : i32
    %c0_i32_0 = arith.constant 0 : i32
    return %arg0, %c0_i32, %arg1 : i32, i32, i32
  }
  func.func @transform_1(%arg0: i32, %arg1: i32) -> (i32, i32, i32) {
    %c0_i32 = arith.constant 0 : i32
    %c0_i32_0 = arith.constant 0 : i32
    return %arg0, %arg1, %c0_i32 : i32, i32, i32
  }
}

</mosaic_0001>

<bundles_post_ra>
// kernel: tpu_custom_call.1
= control target key start
LH: loop header
LB: loop body
LE: loop exit
PB: predicated region body
PF: predicated region fallthrough
CT: control target
= control target key end

     0   :  { %6 = vsyncpa [#allocation3], 0  ;;  %s3253_s0 = inlined_call_operand.hbm [shape: f32[2,4,256], index: 0, kind: input, shape index: {}]   ;;  %s3254_s1 = inlined_call_operand.hbm [shape: f32[2,16,64], index: 1, kind: output, shape index: {}]  }
   0x1   :  { %8 = vsyncpa [#allocation3 + $0x1], 0 }
   0x2   :  { %9 = vsyncpa [#allocation4], 0 }
   0x3   :  { %11 = vsyncpa [#allocation4 + $0x1], 0  ;;  %s2778_s6 = smov 0   ;;  %s2780_s7 = smov 0  }
   0x4   :  { %s2782_s8 = smov 0   ;;  %s2784_s9 = smov 0  }
   0x5   :  { %s2786_s10 = smov 0   ;;  %s2788_s11 = smov 0  }
   0x6 LB: > { %s2495_s12 = sadd.s32 4294967295, %s2741_s11   ;;  %s2496_s13 = sadd.s32 4294967294, %s2741_s11   ;;  %s2741_s11 = sphi %s2788_s11, %s17_s11   ;;  %s2737_s10 = sphi %s2786_s10, %s3266_s10   ;;  %s2733_s9 = sphi %s2784_s9, %s3265_s9   ;;  %s2729_s8 = sphi %s2782_s8, %s3264_s8   ;;  %s2725_s7 = sphi %s2780_s7, %s3263_s7   ;;  %s2721_s6 = sphi %s2778_s6, %s3262_s6  }
   0x7   : > { %s29_s14 = sadd.s32 1, %s2737_s10  ;;  %s38_s15 = sadd.s32 1, %s2729_s8 }
   0x8   : > { %p31_p0 = scmp.ge.s32.totalorder %s29_s14, 2  ;;  %p45_p1 = scmp.ne.s32.totalorder %s2729_s8, %s2725_s7 }
   0x9   : > { %p46_p2 = scmp.eq.s32.totalorder %s2741_s11, 0  ;;  %p51_p3 = scmp.ne.s32.totalorder %s2725_s7, %s2721_s6 }
   0xa   : > { %s3268_s14 = smov (%p31_p0, %s29_s14), 0  ;;  %p52_p5 = scmp.eq.s32.totalorder %s2495_s12, 0 }
   0xb   : > { %p2819_p4 = por %p46_p2, %p45_p1  ;;  %s33_s17 = ssub.s32 %s2737_s10, %s3268_s14 }
   0xc   : > { %p77_p6 = scmp.eq.s32.totalorder %s2495_s12, 1  ;;  %p36_p7 = scmp.eq.s32.totalorder %s33_s17, 0 }
   0xd   : > { %p2825_p8 = por %p52_p5, %p51_p3  ;;  %p83_p10 = scmp.eq.s32.totalorder %s2496_s13, 1 }
   0xe   : > { %p2829_p9 = por %p77_p6, %p45_p1  ;;  %p2560_p13 = scmp.lt.s32.totalorder %s2741_s11, 2 }
   0xf   : > { %s2834_s20 = scalar_select %p36_p7, %s2729_s8, %s38_s15  }
  0x10   : > { %p2836_p11 = por %p83_p10, %p51_p3  ;;  %s103_s22 = sand.u32 1, %s2729_s8  }
  0x11   : > { %s2499_s23 = sshll.u32 %s103_s22, 3  ;;  %s2546_s24 = sshll.u32 %s2737_s10, 7 }
  0x12   : > { %s3258_s21 = scalar_select %p2836_p11, 1, 0 }
  0x13   : > { %s115_s27 = scalar_lea.hbm %s3253_s0, %s2546_s24  ;;  %s107_s28 = scalar_lea.vmem [#allocation2], %s2499_s23 }
  0x14   : > { %s117_s29 = sshll.u32 %s107_s28, 4  ;;  %p2849_p0 = pnand %p2560_p13, %p2819_p4  ;;  %s118_s29 = int_to_ptr.vmem [resolvable:$true] %s117_s29 }
  0x15   : > { %p2502_p1 = scmp.ge.s32.totalorder %s2741_s11, 1  ;;  %p122_p2 = scmp.lt.s32.totalorder %s2741_s11, 3 }
  0x16   : > { %s104_s2 = scalar_lea.sflag [#allocation3], %s103_s22  ;;  %p2635_p3 = pneg %p2849_p0 }
  0x17   : > { %s2646_s3 = scalar_lea.vmem %s118_s29, 128  ;;  %s2743_s4 = smov [#allocation2]  }
  0x18   : > { %p2647_p5 = scmp.ne.s32.totalorder %s118_s29, %s2646_s3  ;;  %s2651_s5 = sshll.u32 %s2743_s4, 4  ;;  %s2652_s5 = int_to_ptr.vmem [resolvable:$false] %s2651_s5 }
  0x19   : > { %s2653_s12 = scalar_lea.vmem %s2652_s5, 256  ;;  %p2654_p10 = scmp.lt.s32.totalorder %s118_s29, %s2652_s5 }
  0x1a   : > { %p2649_p6 = pnand %p2647_p5, %p2635_p3  ;;  %p2655_p12 = scmp.lt.s32.totalorder %s2653_s12, %s2646_s3 }
  0x1c   : > { %p2650_p7 = pneg %p2649_p6  ;;  %p2656_p4 = por %p2655_p12, %p2654_p10 }
  0x1e   : > { %p2657_p13 = pnand %p2656_p4, %p2650_p7 }
  0x20   : > { %2660 = shalt.err (!%p2657_p13)
}
  0x21   : > { %2555 = dma.hbm_to_vmem [thread:$0]  (!%p2849_p0), %s115_s27, 128, %s118_s29, %s104_s2  }
  0x22   : > { %p123_p11 = pnand %p2502_p1, %p122_p2 }
  0x23   : > { %s2864_s13 = sand.u32 (!%p123_p11), 1, %s2725_s7  }
  0x24   : > { %126 = sbr.rel (%p123_p11) target bundleno = 682 (0x2aa), region = 24  ;;  %s2503_s15 = sshll.u32 (!%p123_p11), %s2864_s13, 3 }
  0x25   : > { %s129_s16 = scalar_lea.sflag (!%p123_p11), [#allocation3], %s2864_s13  ;;  %s132_s17 = scalar_lea.vmem (!%p123_p11), [#allocation2], %s2503_s15 }
  0x29   : > { %2712 = dma.done.wait (%p2825_p8), %s129_s16, 128  }
  0x2a   : > { %2714 = vsyncadd (%p2825_p8), %s129_s16, 4294967168  ;;  %v153_v0 = vld [vmem:[%s132_s17] sm:$0xff]  ;;  %s2744_s22 = smov 80   ;;  %s2745_s23 = smov 112   ;;  %v2751_v2 = vmov 1983009808   ;;  %v196_v4 = vlaneseq }
  0x2b   : > { %165 = vrot.lane.b32.xlu1 %v153_v0, %s2744_s22  ;;  %157 = vrot.lane.b32.xlu0 %v153_v0, %s2745_s23  ;;  %s2746_s24 = smov 64   ;;  %s2747_s25 = smov 96   ;;  %v194_v3 = vunpack.c.l.s4 %v2751_v2  ;;  %v155_v10 = vrot.slane %v153_v0, 4  ;;  %v2752_v12 = vmov 1934713408   ;;  %vm2344_vm0 = vcmask 31744  }
  0x2c   : > { %s2748_s26 = smov 32   ;;  %s2749_s27 = smov 48   ;;  %v197_v7 = vshrl.u32 %v196_v4, 7  ;;  %v211_v13 = vunpack.c.l.s4 %v2752_v12  ;;  %vm2347_vm1 = vcmask 64512   ;;  %vm2350_vm2 = vcmask 97280  }
  0x2d   : > { %s2750_s28 = smov 16   ;;  %v195_v6 = vunpack.c.0.s8 %v194_v3  ;;  %s2754_s18 = smov 4   ;;  %vm2353_vm3 = vcmask 130048   ;;  %vm2356_vm4 = vcmask 162816   ;;  %vm2359_vm5 = vcmask 195584  }
  0x2e   : > { %v212_v24 = vunpack.c.0.s8 %v211_v13  ;;  %s2755_s29 = smov 8   ;;  %s2756_s30 = smov 12   ;;  %vm2362_vm6 = vcmask 228352   ;;  %vm2365_vm7 = vcmask 261120   ;;  %vm2368_vm8 = vcmask 293888  }
  0x2f   : > { %169 = vrot.lane.b32.xlu1 %v153_v0, %s2746_s24  ;;  %161 = vrot.lane.b32.xlu0 %v153_v0, %s2747_s25  ;;  %v2875_v16 = vsub.s32 %v195_v6, %v197_v7  ;;  %s2757_s2 = smov 20   ;;  %s2758_s3 = smov 24   ;;  %vm2371_vm9 = vcmask 326656   ;;  %vm2374_vm10 = vcmask 359424   ;;  %vm2377_vm11 = vcmask 392192  }
  0x30   : > { %v2880_v35 = vsub.s32 %v212_v24, %v197_v7  ;;  %s2759_s4 = smov 28   ;;  %s2760_s5 = smov 36   ;;  %vm2380_vm12 = vcmask 424960   ;;  %vm2383_vm13 = vcmask 457728   ;;  %vm2386_vm14 = vcmask 490496  }
  0x31   : > { %s2761_s12 = smov 40   ;;  %s2762_s15 = smov 44   ;;  %vm2389_vm15 = vcmask 523264  }
  0x32   : > { %s2763_s16 = smov 52   ;;  %s2764_s17 = smov 56  }
  0x33   : > { %177 = vrot.lane.b32.xlu1 %v153_v0, %s2748_s26  ;;  %173 = vrot.lane.b32.xlu0 %v153_v0, %s2749_s27  ;;  %s2765_s22 = smov 60   ;;  %s2504_s23 = sshll.u32 %s2864_s13, 4 }
  0x34   : > { %s150_s24 = scalar_lea.vmem [#allocation5], %s2504_s23 }
  0x35   : > { %s2408_s25 = sshll.u32 %s150_s24, 4  ;;  %s3196_s25 = int_to_ptr.vmem [resolvable:$true] %s2408_s25 }
  0x37   : > { %181 = vrot.lane.b32.xlu0 %v153_v0, %s2750_s28 }
  0x9d   : > { %v166_v1 = vpop.permute.xlu1 %165  ;;  %v158_v5 = vpop.permute.xlu0 %157 }
  0x9e   : > { %v167_v15 = vrot.slane %v166_v1, 4  ;;  %v159_v17 = vrot.slane %v158_v5, 4  ;;  %v200_v18 = vcombine.low %v158_v5, %v166_v1 }
  0xa0   : > { %v207_v27 = vrot.slane %v200_v18, %v2875_v16  ;;  %v268_v28 = vcombine.low %v159_v17, %v167_v15 }
  0xa1   : > { %v170_v8 = vpop.permute.xlu1 %169  ;;  %v162_v9 = vpop.permute.xlu0 %161 }
  0xa2   : > { %v163_v11 = vrot.slane %v162_v9, 4  ;;  %v192_v14 = vcombine.low %v153_v0, %v162_v9  ;;  %v171_v21 = vrot.slane %v170_v8, 4  ;;  %v275_v40 = vrot.slane %v268_v28, %v2875_v16 }
  0xa4   : > { %v260_v23 = vcombine.low %v155_v10, %v163_v11  ;;  %v199_v25 = vrot.slane %v192_v14, %v2875_v16 }
  0xa5   : > { %v178_v19 = vpop.permute.xlu1 %177  ;;  %v174_v20 = vpop.permute.xlu0 %173 }
  0xa6   : > { %v179_v22 = vrot.slane %v178_v19, 4  ;;  %v226_v26 = vcombine.low %v170_v8, %v178_v19  ;;  %v175_v31 = vrot.slane %v174_v20, 4  ;;  %v267_v34 = vrot.slane %v260_v23, %v2875_v16 }
  0xa7   : > { %v208_v39 = vcombine.low %v199_v25, %v207_v27  ;;  %v209_v53 = vcombine.high %v199_v25, %v207_v27  ;;  %v2753_v27 = vmov 0.0  }
  0xa8   : > { %v294_v30 = vcombine.low %v171_v21, %v179_v22  ;;  %v233_v36 = vrot.slane %v226_v26, %v2875_v16  ;;  %v276_v44 = vcombine.low %v267_v34, %v275_v40  ;;  %v277_v58 = vcombine.high %v267_v34, %v275_v40 }
  0xa9   : > { %v182_v29 = vpop.permute.xlu0 %181  ;;  %v216_v46 = vrot.slane %v208_v39, %v2880_v35  ;;  %v223_v59 = vrot.slane %v209_v53, %v2880_v35 }
  0xaa   : > { %v183_v32 = vrot.slane %v182_v29, 4  ;;  %v234_v33 = vcombine.low %v174_v20, %v182_v29  ;;  %v301_v41 = vrot.slane %v294_v30, %v2875_v16  ;;  %v284_v52 = vrot.slane %v276_v44, %v2880_v35 }
  0xab   : > { %v291_v63 = vrot.slane %v277_v58, %v2880_v35 }
  0xac   : > { %v241_v37 = vrot.slane %v234_v33, %v2875_v16  ;;  %v302_v38 = vcombine.low %v175_v31, %v183_v32 }
  0xae   : > { %v309_v42 = vrot.slane %v302_v38, %v2875_v16  ;;  %v242_v43 = vcombine.low %v233_v36, %v241_v37  ;;  %v243_v51 = vcombine.high %v233_v36, %v241_v37 }
  0xb0   : > { %v310_v45 = vcombine.low %v301_v41, %v309_v42  ;;  %v250_v47 = vrot.slane %v242_v43, %v2880_v35  ;;  %v311_v54 = vcombine.high %v301_v41, %v309_v42  ;;  %v257_v57 = vrot.slane %v243_v51, %v2880_v35 }
  0xb2   : > { %v2505_v48 = vcombine.high %v216_v46, %v250_v47  ;;  %v344_v49 = vcombine.low %v216_v46, %v250_v47  ;;  %v318_v50 = vrot.slane %v310_v45, %v2880_v35  ;;  %v348_v60 = vcombine.low %v223_v59, %v257_v57 }
  0xb3   : > { %v2507_v61 = vcombine.high %v223_v59, %v257_v57  ;;  %v325_v62 = vrot.slane %v311_v54, %v2880_v35 }
  0xb4   : > { %392 = vxpose.xlu0.b32.start [1/2] (short) (narrow) %v2505_v48, 16  ;;  %360 = vxpose.xlu1.b32.start [1/2] (short) (narrow) %v344_v49, 16  ;;  %v2506_v55 = vcombine.high %v284_v52, %v318_v50  ;;  %v345_v56 = vcombine.low %v284_v52, %v318_v50 }
  0xb5   : > { %v349_v0 = vcombine.low %v291_v63, %v325_v62  ;;  %v2508_v1 = vcombine.high %v291_v63, %v325_v62 }
  0xb8   : > { %393 = vxpose.xlu0.b32.end [2/2] (short) (narrow) %v2506_v55, 16  ;;  %361 = vxpose.xlu1.b32.end [2/2] (short) (narrow) %v345_v56, 16 }
  0xbc   : > { %424 = vxpose.xlu0.b32.start [1/2] (short) (narrow) %v348_v60, 16  ;;  %456 = vxpose.xlu1.b32.start [1/2] (short) (narrow) %v2507_v61, 16 }
  0xc0   : > { %425 = vxpose.xlu0.b32.end [2/2] (short) (narrow) %v349_v0, 16  ;;  %457 = vxpose.xlu1.b32.end [2/2] (short) (narrow) %v2508_v1, 16 }
 0x130   : > { %v408_v2 = vpop.trf.xlu0  ;;  %v376_v3 = vpop.trf.xlu1 }
 0x134   : > { %v409_v4 = vpop.trf.xlu0  ;;  %v377_v5 = vpop.trf.xlu1 }
 0x138   : > { %v440_v6 = vpop.trf.xlu0  ;;  %v472_v7 = vpop.trf.xlu1 }
 0x139   : > { %v488_v8 = vcombine.low %v376_v3, %v440_v6  ;;  %v489_v9 = vcombine.high %v376_v3, %v440_v6  ;;  %v504_v10 = vcombine.low %v408_v2, %v472_v7  ;;  %v505_v11 = vcombine.high %v408_v2, %v472_v7 }
 0x13b   : > { %v496_v12 = vrot.slane %v488_v8, %v2875_v16  ;;  %v512_v13 = vrot.slane %v504_v10, %v2875_v16  ;;  %v503_v14 = vrot.slane %v489_v9, %v2875_v16  ;;  %v519_v15 = vrot.slane %v505_v11, %v2875_v16 }
 0x13c   : > { %v441_v19 = vpop.trf.xlu0  ;;  %v473_v20 = vpop.trf.xlu1 }
 0x13d   : > { %v521_v17 = vcombine.high %v496_v12, %v512_v13  ;;  %v520_v18 = vcombine.low %v496_v12, %v512_v13  ;;  %v536_v23 = vcombine.low %v503_v14, %v519_v15  ;;  %v556_v24 = vcombine.low %v377_v5, %v441_v19 }
 0x13e   : > { %v572_v25 = vcombine.low %v409_v4, %v473_v20  ;;  %v537_v29 = vcombine.high %v503_v14, %v519_v15  ;;  %v557_v36 = vcombine.high %v377_v5, %v441_v19  ;;  %v573_v37 = vcombine.high %v409_v4, %v473_v20 }
 0x13f   : > { %v535_v21 = vrot.slane %v521_v17, %v2880_v35  ;;  %v528_v22 = vrot.slane %v520_v18, %v2880_v35  ;;  %v544_v26 = vrot.slane %v536_v23, %v2880_v35  ;;  %v564_v30 = vrot.slane %v556_v24, %v2875_v16 }
 0x140   : > { %v580_v31 = vrot.slane %v572_v25, %v2875_v16  ;;  %v551_v32 = vrot.slane %v537_v29, %v2880_v35  ;;  %v571_v41 = vrot.slane %v557_v36, %v2875_v16  ;;  %v587_v42 = vrot.slane %v573_v37, %v2875_v16 }
 0x141   : > { %688 = vxpose.xlu1.b32.start.end [1/1] (short) (narrow) %v535_v21, 16  ;;  %624 = vxpose.xlu0.b32.start.end [1/1] (short) (narrow) %v528_v22, 16  ;;  %v552_v28 = vcombine.high %v528_v22, %v2753_v27  ;;  %v553_v33 = vcombine.high %v535_v21, %v2753_v27  ;;  %v554_v38 = vcombine.high %v544_v26, %v2753_v27 }
 0x142   : > { %v588_v34 = vcombine.low %v564_v30, %v580_v31  ;;  %v589_v40 = vcombine.high %v564_v30, %v580_v31  ;;  %v555_v43 = vcombine.high %v551_v32, %v2753_v27  ;;  %v604_v45 = vcombine.low %v571_v41, %v587_v42 }
 0x143   : > { %v605_v48 = vcombine.high %v571_v41, %v587_v42 }
 0x144   : > { %v596_v39 = vrot.slane %v588_v34, %v2880_v35  ;;  %v603_v44 = vrot.slane %v589_v40, %v2880_v35  ;;  %v612_v46 = vrot.slane %v604_v45, %v2880_v35 }
 0x145   : > { %v619_v49 = vrot.slane %v605_v48, %v2880_v35 }
 0x146   : > { %752 = vxpose.xlu1.b32.start.end [1/1] (short) (narrow) %v544_v26, 16  ;;  %656 = vxpose.xlu0.b32.start.end [1/1] (short) (narrow) %v552_v28, 16  ;;  %v620_v47 = vcombine.high %v596_v39, %v2753_v27  ;;  %v621_v50 = vcombine.high %v603_v44, %v2753_v27  ;;  %v622_v51 = vcombine.high %v612_v46, %v2753_v27 }
 0x147   : > { %v623_v52 = vcombine.high %v619_v49, %v2753_v27 }
 0x14b   : > { %816 = vxpose.xlu1.b32.start.end [1/1] (short) (narrow) %v551_v32, 16  ;;  %720 = vxpose.xlu0.b32.start.end [1/1] (short) (narrow) %v553_v33, 16 }
 0x150   : > { %784 = vxpose.xlu0.b32.start.end [1/1] (short) (narrow) %v554_v38, 16  ;;  %880 = vxpose.xlu1.b32.start.end [1/1] (short) (narrow) %v596_v39, 16 }
 0x155   : > { %848 = vxpose.xlu0.b32.start.end [1/1] (short) (narrow) %v555_v43, 16  ;;  %944 = vxpose.xlu1.b32.start.end [1/1] (short) (narrow) %v603_v44, 16 }
 0x15a   : > { %1008 = vxpose.xlu1.b32.start.end [1/1] (short) (narrow) %v612_v46, 16  ;;  %912 = vxpose.xlu0.b32.start.end [1/1] (short) (narrow) %v620_v47, 16 }
 0x15f   : > { %1072 = vxpose.xlu1.b32.start.end [1/1] (short) (narrow) %v619_v49, 16  ;;  %976 = vxpose.xlu0.b32.start.end [1/1] (short) (narrow) %v621_v50, 16 }
 0x164   : > { %1040 = vxpose.xlu0.b32.start.end [1/1] (short) (narrow) %v622_v51, 16 }
 0x169   : > { %1104 = vxpose.xlu0.b32.start.end [1/1] (short) (narrow) %v623_v52, 16 }
 0x1bd   : > { %v640_v53 = vpop.trf.xlu0  ;;  %v704_v54 = vpop.trf.xlu1 }
 0x1be   : > { %v1136_v61 = vcombine.low %v640_v53, %v704_v54  ;;  %v1137_v62 = vcombine.high %v640_v53, %v704_v54 }
 0x1c0   : > { %v1144_v7 = vrot.slane %v1136_v61, %v2875_v16  ;;  %v1151_v8 = vrot.slane %v1137_v62, %v2875_v16 }
 0x1c1   : > { %v641_v55 = vpop.trf.xlu0  ;;  %v705_v56 = vpop.trf.xlu1 }
 0x1c2   : > { %v1408_v63 = vcombine.low %v641_v55, %v705_v56  ;;  %v1409_v0 = vcombine.high %v641_v55, %v705_v56 }
 0x1c4   : > { %v1416_v11 = vrot.slane %v1408_v63, %v2875_v16  ;;  %v1423_v12 = vrot.slane %v1409_v0, %v2875_v16 }
 0x1c5   : > { %v672_v57 = vpop.trf.xlu0  ;;  %v768_v58 = vpop.trf.xlu1 }
 0x1c9   : > { %v673_v59 = vpop.trf.xlu0  ;;  %v769_v60 = vpop.trf.xlu1 }
 0x1cd   : > { %v736_v1 = vpop.trf.xlu0  ;;  %v832_v2 = vpop.trf.xlu1 }
 0x1ce   : > { %v1152_v3 = vcombine.low %v672_v57, %v736_v1  ;;  %v1153_v4 = vcombine.high %v672_v57, %v736_v1  ;;  %v1168_v5 = vcombine.low %v768_v58, %v832_v2  ;;  %v1169_v6 = vcombine.high %v768_v58, %v832_v2 }
 0x1d0   : > { %v1160_v9 = vrot.slane %v1152_v3, %v2875_v16  ;;  %v1167_v10 = vrot.slane %v1153_v4, %v2875_v16  ;;  %v2918_v14 = vrot.slane %v1168_v5, %v2875_v16  ;;  %v2921_v15 = vrot.slane %v1169_v6, %v2875_v16 }
 0x1d1   : > { %v737_v13 = vpop.trf.xlu0  ;;  %v833_v17 = vpop.trf.xlu1 }
 0x1d2   : > { %v1200_v18 = vcombine.low %v1144_v7, %v1160_v9  ;;  %v1201_v19 = vcombine.high %v1144_v7, %v1160_v9  ;;  %v1216_v20 = vcombine.low %v1151_v8, %v1167_v10  ;;  %v1217_v21 = vcombine.high %v1151_v8, %v1167_v10 }
 0x1d3   : > { %v1424_v22 = vcombine.low %v673_v59, %v737_v13  ;;  %v1425_v23 = vcombine.high %v673_v59, %v737_v13  ;;  %v1440_v24 = vcombine.low %v769_v60, %v833_v17  ;;  %v1441_v25 = vcombine.high %v769_v60, %v833_v17 }
 0x1d4   : > { %v1208_v26 = vrot.slane %v1200_v18, %v2880_v35  ;;  %v1215_v27 = vrot.slane %v1201_v19, %v2880_v35  ;;  %v1224_v28 = vrot.slane %v1216_v20, %v2880_v35  ;;  %v1231_v29 = vrot.slane %v1217_v21, %v2880_v35 }
 0x1d5   : > { %v1432_v30 = vrot.slane %v1424_v22, %v2875_v16  ;;  %v1439_v31 = vrot.slane %v1425_v23, %v2875_v16  ;;  %v800_v32 = vpop.trf.xlu0  ;;  %v2930_v33 = vrot.slane %v1440_v24, %v2875_v16  ;;  %v2933_v34 = vrot.slane %v1441_v25, %v2875_v16  ;;  %v896_v36 = vpop.trf.xlu1 }
 0x1d6   : > { %v2509_v37 = vcombine.low %v1208_v26, %v1215_v27  ;;  %v2511_v38 = vcombine.high %v1208_v26, %v1215_v27  ;;  %v2513_v39 = vcombine.low %v1224_v28, %v1231_v29  ;;  %v2515_v40 = vcombine.high %v1224_v28, %v1231_v29 }
 0x1d7   : > { %v1472_v41 = vcombine.low %v1416_v11, %v1432_v30  ;;  %v1473_v42 = vcombine.high %v1416_v11, %v1432_v30  ;;  %v1488_v43 = vcombine.low %v1423_v12, %v1439_v31  ;;  %v1489_v44 = vcombine.high %v1423_v12, %v1439_v31 }
 0x1d8   : > { %v1688_v45 = vrot.slane %v2509_v37, %v2875_v16  ;;  %v1704_v46 = vrot.slane %v2511_v38, %v2875_v16  ;;  %v1720_v47 = vrot.slane %v2513_v39, %v2875_v16  ;;  %v1736_v48 = vrot.slane %v2515_v40, %v2875_v16 }
 0x1d9   : > { %v1480_v49 = vrot.slane %v1472_v41, %v2880_v35  ;;  %v1487_v50 = vrot.slane %v1473_v42, %v2880_v35  ;;  %v1496_v51 = vrot.slane %v1488_v43, %v2880_v35  ;;  %v1503_v52 = vrot.slane %v1489_v44, %v2880_v35  ;;  %v801_v53 = vpop.trf.xlu0  ;;  %v897_v54 = vpop.trf.xlu1 }
 0x1da   : > { %v1744_v55 = vcombine.low %v1688_v45, %v1704_v46  ;;  %v1776_v56 = vcombine.low %v1720_v47, %v1736_v48  ;;  %v1745_v57 = vcombine.high %v1688_v45, %v1704_v46  ;;  %v1777_v58 = vcombine.high %v1720_v47, %v1736_v48 }
 0x1db   : > { %v2517_v59 = vcombine.low %v1480_v49, %v1487_v50  ;;  %v2519_v60 = vcombine.high %v1480_v49, %v1487_v50  ;;  %v2521_v61 = vcombine.low %v1496_v51, %v1503_v52  ;;  %v2523_v62 = vcombine.high %v1496_v51, %v1503_v52 }
 0x1dc   : > { %v2944_v63 = vrot.slane %v1744_v55, %v2880_v35  ;;  %v2947_v0 = vrot.slane %v1776_v56, %v2880_v35  ;;  %v1759_v1 = vrot.slane %v1745_v57, %v2880_v35  ;;  %v1791_v2 = vrot.slane %v1777_v58, %v2880_v35 }
 0x1dd   : > { %v864_v3 = vpop.trf.xlu0  ;;  %v960_v4 = vpop.trf.xlu1  ;;  %v2952_v5 = vrot.slane %v2517_v59, %v2875_v16  ;;  %v2955_v6 = vrot.slane %v2519_v60, %v2875_v16  ;;  %v2958_v7 = vrot.slane %v2521_v61, %v2875_v16  ;;  %v2961_v8 = vrot.slane %v2523_v62, %v2875_v16 }
 0x1de   : > { %v1184_v9 = vcombine.low %v800_v32, %v864_v3  ;;  %v1185_v10 = vcombine.high %v800_v32, %v864_v3  ;;  %v1809_v11 = vcombine.high %v2944_v63, %v2947_v0  ;;  %v1810_v12 = vcombine.low %v1759_v1, %v1791_v2 }
 0x1df   : > { %v1272_v13 = vcombine.low %v896_v36, %v960_v4  ;;  %v1273_v17 = vcombine.high %v896_v36, %v960_v4  ;;  %v1811_v18 = vcombine.high %v1759_v1, %v1791_v2  ;;  %v1881_v19 = vcombine.high %v2952_v5, %v2955_v6 }
 0x1e0   : > { %v1192_v20 = vrot.slane %v1184_v9, %v2875_v16  ;;  %v1199_v21 = vrot.slane %v1185_v10, %v2875_v16  ;;  %2226 = vrot.lane.b32.xlu1 %v1809_v11, %s2754_s18  ;;  %v1913_v22 = vcombine.high %v2958_v7, %v2961_v8  ;;  %v1880_v23 = vcombine.low %v2952_v5, %v2955_v6 }
 0x1e1   : > { %v865_v24 = vpop.trf.xlu0  ;;  %v2975_v25 = vrot.slane %v1272_v13, %v2875_v16  ;;  %v2978_v26 = vrot.slane %v1273_v17, %v2875_v16  ;;  %v961_v27 = vpop.trf.xlu1  ;;  %v2981_v28 = vrot.slane %v1881_v19, %v2880_v35  ;;  %v1912_v29 = vcombine.low %v2958_v7, %v2961_v8 }
 0x1e2   : > { %v1232_v30 = vcombine.low %v2918_v14, %v1192_v20  ;;  %v1233_v31 = vcombine.high %v2918_v14, %v1192_v20  ;;  %v1248_v32 = vcombine.low %v2921_v15, %v1199_v21  ;;  %v1249_v36 = vcombine.high %v2921_v15, %v1199_v21 }
 0x1e3   : > { %v1456_v37 = vcombine.low %v801_v53, %v865_v24  ;;  %v1457_v38 = vcombine.high %v801_v53, %v865_v24  ;;  %v1544_v39 = vcombine.low %v897_v54, %v961_v27  ;;  %v1545_v40 = vcombine.high %v897_v54, %v961_v27 }
 0x1e4   : > { %v1240_v41 = vrot.slane %v1232_v30, %v2880_v35  ;;  %v1247_v42 = vrot.slane %v1233_v31, %v2880_v35  ;;  %v1256_v43 = vrot.slane %v1248_v32, %v2880_v35  ;;  %v1263_v44 = vrot.slane %v1249_v36, %v2880_v35  ;;  %2234 = vrot.lane.b32.xlu1 %v1810_v12, %s2755_s29 }
 0x1e5   : > { %v1464_v14 = vrot.slane %v1456_v37, %v2875_v16  ;;  %v1471_v45 = vrot.slane %v1457_v38, %v2875_v16  ;;  %v928_v15 = vpop.trf.xlu0  ;;  %v2997_v46 = vrot.slane %v1544_v39, %v2875_v16  ;;  %v3000_v47 = vrot.slane %v1545_v40, %v2875_v16  ;;  %v1024_v48 = vpop.trf.xlu1 }
 0x1e6   : > { %v2510_v49 = vcombine.low %v1240_v41, %v1247_v42  ;;  %v2512_v50 = vcombine.high %v1240_v41, %v1247_v42  ;;  %v2514_v51 = vcombine.low %v1256_v43, %v1263_v44  ;;  %v2516_v52 = vcombine.high %v1256_v43, %v1263_v44 }
 0x1e7   : > { %v1504_v53 = vcombine.low %v2930_v33, %v1464_v14  ;;  %v1505_v54 = vcombine.high %v2930_v33, %v1464_v14  ;;  %v1520_v55 = vcombine.low %v2933_v34, %v1471_v45  ;;  %v1521_v56 = vcombine.high %v2933_v34, %v1471_v45 }
 0x1e8   : > { %2242 = vrot.lane.b32.xlu1 %v1811_v18, %s2756_s30  ;;  %v1927_v57 = vrot.slane %v1913_v22, %v2880_v35  ;;  %v1695_v58 = vrot.slane %v2510_v49, %v2875_v16  ;;  %v1711_v59 = vrot.slane %v2512_v50, %v2875_v16  ;;  %v1727_v60 = vrot.slane %v2514_v51, %v2875_v16 }
 0x1e9   : > { %v1512_v61 = vrot.slane %v1504_v53, %v2880_v35  ;;  %v1519_v62 = vrot.slane %v1505_v54, %v2880_v35  ;;  %v1528_v33 = vrot.slane %v1520_v55, %v2880_v35  ;;  %v1535_v1 = vrot.slane %v1521_v56, %v2880_v35  ;;  %v929_v34 = vpop.trf.xlu0  ;;  %v3015_v2 = vpop.trf.xlu1 }
 0x1ea   : > { %v1946_v3 = vcombine.low %v2981_v28, %v1927_v57  ;;  %v1947_v4 = vcombine.high %v2981_v28, %v1927_v57  ;;  %v1743_v9 = vrot.slane %v2516_v52, %v2875_v16  ;;  %v1760_v10 = vcombine.low %v1695_v58, %v1711_v59 }
 0x1eb   : > { %v2518_v11 = vcombine.low %v1512_v61, %v1519_v62  ;;  %v2520_v12 = vcombine.high %v1512_v61, %v1519_v62  ;;  %v2522_v13 = vcombine.low %v1528_v33, %v1535_v1  ;;  %v2524_v17 = vcombine.high %v1528_v33, %v1535_v1 }
 0x1ec   : > { %2236 = vrot.lane.b32.xlu1 %v1946_v3, %s2755_s29  ;;  %v1768_v18 = vrot.slane %v1760_v10, %v2880_v35  ;;  %v1792_v19 = vcombine.low %v1727_v60, %v1743_v9  ;;  %v1761_v20 = vcombine.high %v1695_v58, %v1711_v59  ;;  %v1793_v21 = vcombine.high %v1727_v60, %v1743_v9 }
 0x1ed   : > { %v992_v22 = vpop.trf.xlu0  ;;  %v3023_v24 = vrot.slane %v2518_v11, %v2875_v16  ;;  %v3026_v27 = vrot.slane %v2520_v12, %v2875_v16  ;;  %v3029_v28 = vrot.slane %v2522_v13, %v2875_v16  ;;  %v3032_v30 = vrot.slane %v2524_v17, %v2875_v16  ;;  %v1088_v31 = vpop.trf.xlu1 }
 0x1ee   : > { %v1288_v32 = vcombine.low %v928_v15, %v992_v22  ;;  %v1289_v36 = vcombine.high %v928_v15, %v992_v22  ;;  %v1800_v37 = vrot.slane %v1792_v19, %v2880_v35  ;;  %v1304_v38 = vcombine.low %v1024_v48, %v1088_v31 }
 0x1ef   : > { %v1896_v39 = vcombine.low %v3023_v24, %v3026_v27  ;;  %v1928_v40 = vcombine.low %v3029_v28, %v3032_v30  ;;  %v1305_v41 = vcombine.high %v1024_v48, %v1088_v31  ;;  %v3040_v42 = vrot.slane %v1761_v20, %v2880_v35 }
 0x1f0   : > { %v1296_v43 = vrot.slane %v1288_v32, %v2875_v16  ;;  %v1303_v44 = vrot.slane %v1289_v36, %v2875_v16  ;;  %2244 = vrot.lane.b32.xlu1 %v1947_v4, %s2756_s30  ;;  %v1812_v14 = vcombine.low %v1768_v18, %v1800_v37  ;;  %v1813_v45 = vcombine.high %v1768_v18, %v1800_v37  ;;  %s2661_s30 = scalar_lea.vmem %s3196_s25, 256 }
 0x1f1   : > { %v993_v15 = vpop.trf.xlu0  ;;  %v1904_v49 = vrot.slane %v1896_v39, %v2880_v35  ;;  %v1936_v50 = vrot.slane %v1928_v40, %v2880_v35  ;;  %v3048_v51 = vrot.slane %v1304_v38, %v2875_v16  ;;  %v3051_v48 = vrot.slane %v1305_v41, %v2875_v16  ;;  %v1089_v4 = vpop.trf.xlu1  ;;  %p2662_p8 = scmp.ne.s32.totalorder %s3196_s25, %s2661_s30 }
 0x1f2   : > { %v1336_v52 = vcombine.low %v2975_v25, %v1296_v43  ;;  %v1337_v53 = vcombine.high %v2975_v25, %v1296_v43  ;;  %v1352_v54 = vcombine.low %v2978_v26, %v1303_v44  ;;  %v1353_v55 = vcombine.high %v2978_v26, %v1303_v44  ;;  %2250 = vrot.lane.b32.xlu0 %v1812_v14, %s2750_s28 }
 0x1f3   : > { %v1560_v56 = vcombine.low %v929_v34, %v993_v15  ;;  %v1561_v57 = vcombine.high %v929_v34, %v993_v15  ;;  %v1948_v58 = vcombine.low %v1904_v49, %v1936_v50  ;;  %v1807_v59 = vrot.slane %v1793_v21, %v2880_v35  ;;  %p2663_p11 = pnand %p2662_p8, %p2829_p9 }
 0x1f4   : > { %v1344_v60 = vrot.slane %v1336_v52, %v2880_v35  ;;  %v1351_v61 = vrot.slane %v1337_v53, %v2880_v35  ;;  %v1360_v62 = vrot.slane %v1352_v54, %v2880_v35  ;;  %v1367_v33 = vrot.slane %v1353_v55, %v2880_v35 }
 0x1f5   : > { %v1568_v25 = vrot.slane %v1560_v56, %v2875_v16  ;;  %v1575_v1 = vrot.slane %v1561_v57, %v2875_v16  ;;  %2252 = vrot.lane.b32.xlu1 %v1948_v58, %s2750_s28  ;;  %v1056_v26 = vpop.trf.xlu0  ;;  %v1814_v34 = vcombine.low %v3040_v42, %v1807_v59  ;;  %v1949_v3 = vcombine.high %v1904_v49, %v1936_v50  ;;  %p2664_p12 = pneg %p2663_p11 }
 0x1f6   : > { %v2525_v9 = vcombine.low %v1344_v60, %v1351_v61  ;;  %v2527_v10 = vcombine.high %v1344_v60, %v1351_v61  ;;  %v2529_v11 = vcombine.low %v1360_v62, %v1367_v33  ;;  %v2531_v12 = vcombine.high %v1360_v62, %v1367_v33  ;;  %2258 = vrot.lane.b32.xlu0 %v1813_v45, %s2757_s2 }
 0x1f7   : > { %v1608_v13 = vcombine.low %v2997_v46, %v1568_v25  ;;  %v1609_v17 = vcombine.high %v2997_v46, %v1568_v25  ;;  %v1624_v18 = vcombine.low %v3000_v47, %v1575_v1  ;;  %v1625_v19 = vcombine.high %v3000_v47, %v1575_v1 }
 0x1f8   : > { %v1576_v20 = vcombine.low %v3015_v2, %v1089_v4  ;;  %v1577_v21 = vcombine.high %v3015_v2, %v1089_v4  ;;  %v1815_v22 = vcombine.high %v3040_v42, %v1807_v59  ;;  %v1897_v31 = vcombine.high %v3023_v24, %v3026_v27 }
 0x1f9   : > { %v1616_v32 = vrot.slane %v1608_v13, %v2880_v35  ;;  %v1623_v36 = vrot.slane %v1609_v17, %v2880_v35  ;;  %v1632_v37 = vrot.slane %v1624_v18, %v2880_v35  ;;  %v1639_v46 = vrot.slane %v1625_v19, %v2880_v35  ;;  %2260 = vrot.lane.b32.xlu1 %v1949_v3, %s2757_s2  ;;  %v1057_v38 = vpop.trf.xlu0  ;;  %s2766_s2 = smov [#allocation5]  }
 0x1fa   : > { %2266 = vrot.lane.b32.xlu0 %v1814_v34, %s2758_s3  ;;  %v3081_v47 = vrot.slane %v1576_v20, %v2875_v16  ;;  %v3084_v2 = vrot.slane %v1577_v21, %v2875_v16  ;;  %v1911_v24 = vrot.slane %v1897_v31, %v2880_v35  ;;  %v1929_v27 = vcombine.high %v3029_v28, %v3032_v30 }
 0x1fb   : > { %v2533_v39 = vcombine.low %v1616_v32, %v1623_v36  ;;  %v2535_v40 = vcombine.high %v1616_v32, %v1623_v36  ;;  %v2537_v41 = vcombine.low %v1632_v37, %v1639_v46  ;;  %v2539_v42 = vcombine.high %v1632_v37, %v1639_v46 }
 0x1fc   : > { %v1943_v43 = vrot.slane %v1929_v27, %v2880_v35  ;;  %v3094_v44 = vrot.slane %v1880_v23, %v2880_v35  ;;  %v3100_v14 = vrot.slane %v1912_v29, %v2880_v35  ;;  %v1960_v28 = vrot.slane %v2525_v9, %v2875_v16 }
 0x1fd   : > { %v1120_v30 = vpop.trf.xlu0  ;;  %v1976_v45 = vrot.slane %v2527_v10, %v2875_v16  ;;  %v3105_v15 = vrot.slane %v2529_v11, %v2875_v16  ;;  %v2008_v49 = vrot.slane %v2531_v12, %v2875_v16  ;;  %v3109_v5 = vrot.slane %v2533_v39, %v2875_v16 }
 0x1fe   : > { %2274 = vrot.lane.b32.xlu0 %v1815_v22, %s2759_s4  ;;  %v1950_v6 = vcombine.low %v1911_v24, %v1943_v43  ;;  %v1320_v7 = vcombine.low %v1056_v26, %v1120_v30  ;;  %v1321_v8 = vcombine.high %v1056_v26, %v1120_v30  ;;  %v1945_v23 = vcombine.high %v3094_v44, %v3100_v14 }
 0x1ff   : > { %v1951_v29 = vcombine.high %v1911_v24, %v1943_v43  ;;  %v2016_v50 = vcombine.low %v1960_v28, %v1976_v45  ;;  %v2048_v52 = vcombine.low %v3105_v15, %v2008_v49  ;;  %v2112_v53 = vrot.slane %v2535_v40, %v2875_v16 }
 0x200   : > { %2268 = vrot.lane.b32.xlu1 %v1950_v6, %s2758_s3  ;;  %v1328_v54 = vrot.slane %v1320_v7, %v2875_v16  ;;  %v1335_v55 = vrot.slane %v1321_v8, %v2875_v16  ;;  %v3119_v56 = vrot.slane %v2537_v41, %v2875_v16  ;;  %v2144_v57 = vrot.slane %v2539_v42, %v2875_v16  ;;  %s2665_s3 = sshll.u32 %s2766_s2, 4  ;;  %s2666_s3 = int_to_ptr.vmem [resolvable:$false] %s2665_s3 }
 0x201   : > { %v1121_v58 = vpop.trf.xlu0  ;;  %v2024_v59 = vrot.slane %v2016_v50, %v2880_v35  ;;  %v2056_v60 = vrot.slane %v2048_v52, %v2880_v35  ;;  %v2152_v61 = vcombine.low %v3109_v5, %v2112_v53  ;;  %v2017_v62 = vcombine.high %v1960_v28, %v1976_v45  ;;  %p2668_p0 = scmp.lt.s32.totalorder %s3196_s25, %s2666_s3 }
 0x202   : > { %v1368_v33 = vcombine.low %v3048_v51, %v1328_v54  ;;  %v1369_v25 = vcombine.high %v3048_v51, %v1328_v54  ;;  %v1384_v1 = vcombine.low %v3051_v48, %v1335_v55  ;;  %v1385_v26 = vcombine.high %v3051_v48, %v1335_v55  ;;  %2228 = vrot.lane.b32.xlu0 %v1945_v23, %s2754_s18 }
 0x203   : > { %v1592_v34 = vcombine.low %v1057_v38, %v1121_v58  ;;  %v1593_v3 = vcombine.high %v1057_v38, %v1121_v58  ;;  %v2080_v4 = vcombine.low %v2024_v59, %v2056_v60  ;;  %v2160_v9 = vrot.slane %v2152_v61, %v2880_v35 }
 0x204   : > { %v1376_v10 = vrot.slane %v1368_v33, %v2880_v35  ;;  %v1383_v11 = vrot.slane %v1369_v25, %v2880_v35  ;;  %v1392_v12 = vrot.slane %v1384_v1, %v2880_v35  ;;  %v1399_v13 = vrot.slane %v1385_v26, %v2880_v35  ;;  %2276 = vrot.lane.b32.xlu1 %v1951_v29, %s2759_s4  ;;  %s2667_s4 = scalar_lea.vmem %s2666_s3, 512 }
 0x205   : > { %v1600_v51 = vrot.slane %v1592_v34, %v2875_v16  ;;  %v1607_v48 = vrot.slane %v1593_v3, %v2875_v16  ;;  %v2184_v17 = vcombine.low %v3119_v56, %v2144_v57  ;;  %v2081_v18 = vcombine.high %v2024_v59, %v2056_v60  ;;  %p2669_p1 = scmp.lt.s32.totalorder %s2667_s4, %s2661_s30 }
 0x206   : > { %v2526_v19 = vcombine.low %v1376_v10, %v1383_v11  ;;  %v2528_v20 = vcombine.high %v1376_v10, %v1383_v11  ;;  %v2530_v21 = vcombine.low %v1392_v12, %v1399_v13  ;;  %v2532_v22 = vcombine.high %v1392_v12, %v1399_v13  ;;  %2282 = vrot.lane.b32.xlu0 %v2080_v4, %s2748_s26 }
 0x207   : > { %v1640_v31 = vcombine.low %v3081_v47, %v1600_v51  ;;  %v1641_v32 = vcombine.high %v3081_v47, %v1600_v51  ;;  %v1656_v36 = vcombine.low %v3084_v2, %v1607_v48  ;;  %v1657_v37 = vcombine.high %v3084_v2, %v1607_v48  ;;  %p2670_p2 = por %p2669_p1, %p2668_p0 }
 0x208   : > { %v2192_v46 = vrot.slane %v2184_v17, %v2880_v35  ;;  %v2031_v38 = vrot.slane %v2017_v62, %v2880_v35  ;;  %v2049_v24 = vcombine.high %v3105_v15, %v2008_v49  ;;  %v2153_v27 = vcombine.high %v3109_v5, %v2112_v53 }
 0x209   : > { %v1648_v39 = vrot.slane %v1640_v31, %v2880_v35  ;;  %v1655_v40 = vrot.slane %v1641_v32, %v2880_v35  ;;  %v1664_v41 = vrot.slane %v1656_v36, %v2880_v35  ;;  %v1671_v47 = vrot.slane %v1657_v37, %v2880_v35  ;;  %p2671_p3 = pnand %p2670_p2, %p2664_p12 }
 0x20a   : > { %v2216_v42 = vcombine.low %v2160_v9, %v2192_v46  ;;  %2290 = vrot.lane.b32.xlu0 %v2081_v18, %s2760_s5  ;;  %v2217_v2 = vcombine.high %v2160_v9, %v2192_v46  ;;  %v2063_v43 = vrot.slane %v2049_v24, %v2880_v35  ;;  %v2167_v5 = vrot.slane %v2153_v27, %v2880_v35 }
 0x20b   : > { %v2534_v28 = vcombine.low %v1648_v39, %v1655_v40  ;;  %v2536_v30 = vcombine.high %v1648_v39, %v1655_v40  ;;  %v2538_v45 = vcombine.low %v1664_v41, %v1671_v47  ;;  %v2540_v15 = vcombine.high %v1664_v41, %v1671_v47 }
 0x20c   : > { %2284 = vrot.lane.b32.xlu1 %v2216_v42, %s2748_s26  ;;  %v2082_v49 = vcombine.low %v2031_v38, %v2063_v43  ;;  %v2185_v6 = vcombine.high %v3119_v56, %v2144_v57  ;;  %v1967_v7 = vrot.slane %v2526_v19, %v2875_v16  ;;  %v1983_v8 = vrot.slane %v2528_v20, %v2875_v16  ;;  %s2547_s26 = sshll.u32 %s2733_s9, 8  ;;  %s2393_s9 = scalar_lea.sflag [#allocation4], %s2864_s13 }
 0x20d   : > { %v1999_v23 = vrot.slane %v2530_v21, %v2875_v16  ;;  %v2015_v29 = vrot.slane %v2532_v22, %v2875_v16  ;;  %v2103_v50 = vrot.slane %v2534_v28, %v2875_v16  ;;  %v2119_v53 = vrot.slane %v2536_v30, %v2875_v16  ;;  %s3202_s18 = scalar_lea.hbm %s3254_s1, %s2547_s26 }
 0x20e   : > { %2298 = vrot.lane.b32.xlu0 %v2082_v49, %s2761_s12  ;;  %v2199_v52 = vrot.slane %v2185_v6, %v2880_v35  ;;  %v2135_v54 = vrot.slane %v2538_v45, %v2875_v16  ;;  %v2151_v55 = vrot.slane %v2540_v15, %v2875_v16  ;;  %v2032_v56 = vcombine.low %v1967_v7, %v1983_v8 }
 0x20f   : > { %v2064_v57 = vcombine.low %v1999_v23, %v2015_v29  ;;  %v2083_v58 = vcombine.high %v2031_v38, %v2063_v43  ;;  %v2168_v59 = vcombine.low %v2103_v50, %v2119_v53  ;;  %v2033_v25 = vcombine.high %v1967_v7, %v1983_v8 }
 0x210   : > { %2292 = vrot.lane.b32.xlu1 %v2217_v2, %s2760_s5  ;;  %v2200_v60 = vcombine.low %v2135_v54, %v2151_v55  ;;  %v2040_v61 = vrot.slane %v2032_v56, %v2880_v35  ;;  %v2218_v33 = vcombine.low %v2167_v5, %v2199_v52  ;;  %v2065_v34 = vcombine.high %v1999_v23, %v2015_v29 }
 0x211   : > { %v2072_v62 = vrot.slane %v2064_v57, %v2880_v35  ;;  %v2176_v26 = vrot.slane %v2168_v59, %v2880_v35  ;;  %v1808_v3 = vcombine.low %v2944_v63, %v2947_v0  ;;  %v2219_v4 = vcombine.high %v2167_v5, %v2199_v52 }
 0x212   : > { %2306 = vrot.lane.b32.xlu0 %v2083_v58, %s2762_s15  ;;  %v2208_v16 = vrot.slane %v2200_v60, %v2880_v35  ;;  %v1944_v9 = vcombine.low %v3094_v44, %v3100_v14  ;;  %v2047_v12 = vrot.slane %v2033_v25, %v2880_v35  ;;  %v2079_v13 = vrot.slane %v2065_v34, %v2880_v35 }
 0x213   : > { %v2084_v1 = vcombine.low %v2040_v61, %v2072_v62  ;;  %v2085_v11 = vcombine.high %v2040_v61, %v2072_v62  ;;  %v2169_v51 = vcombine.high %v2103_v50, %v2119_v53  ;;  %v2201_v48 = vcombine.high %v2135_v54, %v2151_v55 }
 0x214   : > { %2300 = vrot.lane.b32.xlu1 %v2218_v33, %s2761_s12  ;;  %v2220_v10 = vcombine.low %v2176_v26, %v2208_v16  ;;  %v2086_v63 = vcombine.low %v2047_v12, %v2079_v13  ;;  %v2221_v0 = vcombine.high %v2176_v26, %v2208_v16  ;;  %v2087_v14 = vcombine.high %v2047_v12, %v2079_v13 }
 0x215   : > { %v2183_v17 = vrot.slane %v2169_v51, %v2880_v35  ;;  %v2215_v44 = vrot.slane %v2201_v48, %v2880_v35 }
 0x216   : > { %2314 = vrot.lane.b32.xlu0 %v2084_v1, %s2749_s27 }
 0x217   : > { %v2222_v18 = vcombine.low %v2183_v17, %v2215_v44  ;;  %v2223_v19 = vcombine.high %v2183_v17, %v2215_v44 }
 0x218   : > { %2308 = vrot.lane.b32.xlu1 %v2219_v4, %s2762_s15 }
 0x21a   : > { %2322 = vrot.lane.b32.xlu0 %v2085_v11, %s2763_s16 }
 0x21c   : > { %2316 = vrot.lane.b32.xlu1 %v2220_v10, %s2749_s27 }
 0x21e   : > { %2330 = vrot.lane.b32.xlu0 %v2086_v63, %s2764_s17 }
 0x220   : > { %2324 = vrot.lane.b32.xlu1 %v2221_v0, %s2763_s16 }
 0x222   : > { %2338 = vrot.lane.b32.xlu0 %v2087_v14, %s2765_s22 }
 0x224   : > { %2332 = vrot.lane.b32.xlu1 %v2222_v18, %s2764_s17 }
 0x228   : > { %2340 = vrot.lane.b32.xlu1 %v2223_v19, %s2765_s22 }
 0x252   : > { %v2227_v20 = vpop.permute.xlu1 %2226 }
 0x253   : > { %v2345_v6 = vsel %vm2344_vm0, %v1808_v3, %v2227_v20 }
 0x256   : > { %v2235_v21 = vpop.permute.xlu1 %2234 }
 0x257   : > { %v2348_v7 = vsel %vm2347_vm1, %v2345_v6, %v2235_v21 }
 0x25a   : > { %v2243_v22 = vpop.permute.xlu1 %2242 }
 0x25b   : > { %v2351_v23 = vsel %vm2350_vm2, %v2348_v7, %v2243_v22 }
 0x25e   : > { %v2237_v31 = vpop.permute.xlu1 %2236 }
 0x262   : > { %v2245_v32 = vpop.permute.xlu1 %2244 }
 0x264   : > { %v2251_v36 = vpop.permute.xlu0 %2250 }
 0x265   : > { %v2354_v50 = vsel %vm2353_vm3, %v2351_v23, %v2251_v36 }
 0x267   : > { %v2253_v37 = vpop.permute.xlu1 %2252 }
 0x268   : > { %v2259_v46 = vpop.permute.xlu0 %2258 }
 0x269   : > { %v2357_v53 = vsel %vm2356_vm4, %v2354_v50, %v2259_v46 }
 0x26b   : > { %v2261_v24 = vpop.permute.xlu1 %2260 }
 0x26c   : > { %v2267_v38 = vpop.permute.xlu0 %2266 }
 0x26d   : > { %v2360_v54 = vsel %vm2359_vm5, %v2357_v53, %v2267_v38 }
 0x270   : > { %v2275_v27 = vpop.permute.xlu0 %2274 }
 0x271   : > { %v2363_v57 = vsel %vm2362_vm6, %v2360_v54, %v2275_v27 }
 0x272   : > { %v2269_v35 = vpop.permute.xlu1 %2268 }
 0x274   : > { %v2229_v39 = vpop.permute.xlu0 %2228 }
 0x275   : > { %v2346_v42 = vsel %vm2344_vm0, %v1944_v9, %v2229_v39 }
 0x276   : > { %v2277_v40 = vpop.permute.xlu1 %2276  ;;  %v2349_v43 = vsel %vm2347_vm1, %v2346_v42, %v2237_v31 }
 0x277   : > { %v2352_v45 = vsel %vm2350_vm2, %v2349_v43, %v2245_v32 }
 0x278   : > { %v2283_v41 = vpop.permute.xlu0 %2282  ;;  %v2355_v49 = vsel %vm2353_vm3, %v2352_v45, %v2253_v37 }
 0x279   : > { %v2358_v29 = vsel %vm2356_vm4, %v2355_v49, %v2261_v24  ;;  %v2366_v58 = vsel %vm2365_vm7, %v2363_v57, %v2283_v41 }
 0x27a   : > { %v2361_v55 = vsel %vm2359_vm5, %v2358_v29, %v2269_v35 }
 0x27b   : > { %v2364_v60 = vsel %vm2362_vm6, %v2361_v55, %v2277_v40 }
 0x27c   : > { %v2291_v47 = vpop.permute.xlu0 %2290 }
 0x27d   : > { %v2369_v61 = vsel %vm2368_vm8, %v2366_v58, %v2291_v47 }
 0x27e   : > { %v2285_v2 = vpop.permute.xlu1 %2284 }
 0x27f   : > { %v2367_v1 = vsel %vm2365_vm7, %v2364_v60, %v2285_v2 }
 0x280   : > { %v2299_v28 = vpop.permute.xlu0 %2298 }
 0x281   : > { %v2372_v62 = vsel %vm2371_vm9, %v2369_v61, %v2299_v28 }
 0x282   : > { %v2293_v30 = vpop.permute.xlu1 %2292 }
 0x283   : > { %v2370_v9 = vsel %vm2368_vm8, %v2367_v1, %v2293_v30 }
 0x284   : > { %v2307_v15 = vpop.permute.xlu0 %2306 }
 0x285   : > { %v2375_v25 = vsel %vm2374_vm10, %v2372_v62, %v2307_v15 }
 0x286   : > { %v2301_v5 = vpop.permute.xlu1 %2300 }
 0x287   : > { %v2373_v11 = vsel %vm2371_vm9, %v2370_v9, %v2301_v5 }
 0x288   : > { %v2315_v8 = vpop.permute.xlu0 %2314 }
 0x289   : > { %v2378_v26 = vsel %vm2377_vm11, %v2375_v25, %v2315_v8 }
 0x28a   : > { %v2309_v52 = vpop.permute.xlu1 %2308 }
 0x28b   : > { %v2376_v13 = vsel %vm2374_vm10, %v2373_v11, %v2309_v52 }
 0x28c   : > { %v2323_v56 = vpop.permute.xlu0 %2322 }
 0x28d   : > { %v2381_v34 = vsel %vm2380_vm12, %v2378_v26, %v2323_v56 }
 0x28e   : > { %v2317_v59 = vpop.permute.xlu1 %2316 }
 0x28f   : > { %v2379_v51 = vsel %vm2377_vm11, %v2376_v13, %v2317_v59 }
 0x290   : > { %v2331_v33 = vpop.permute.xlu0 %2330 }
 0x291   : > { %v2384_v3 = vsel %vm2383_vm13, %v2381_v34, %v2331_v33 }
 0x292   : > { %v2325_v16 = vpop.permute.xlu1 %2324 }
 0x293   : > { %v2382_v48 = vsel %vm2380_vm12, %v2379_v51, %v2325_v16 }
 0x294   : > { %v2339_v4 = vpop.permute.xlu0 %2338 }
 0x295   : > { %v2387_v10 = vsel %vm2386_vm14, %v2384_v3, %v2339_v4 }
 0x296   : > { %v2333_v12 = vpop.permute.xlu1 %2332  ;;  %2390 = vst.msk [vmem:[%s150_s24] sm:$0xff] %vm2389_vm15, %v2387_v10 }
 0x297   : > { %v2385_v63 = vsel %vm2383_vm13, %v2382_v48, %v2333_v12 }
 0x29a   : > { %v2341_v0 = vpop.permute.xlu1 %2340 }
 0x29b   : > { %v2388_v17 = vsel %vm2386_vm14, %v2385_v63, %v2341_v0 }
 0x29c   : > { %2391 = vst.msk [vmem:[%s150_s24 + $0x8] sm:$0xff] %vm2389_vm15, %v2388_v17 }
 0x29d   : > { %2674 = shalt.err (!%p2671_p3)
}
 0x29e   : > { %s2675_s5 = scalar_lea.hbm %s3202_s18, 256  ;;  %s2679_s16 = scalar_lea.hbm %s3254_s1, 512 }
 0x29f   : > { %p2676_p5 = scmp.ne.s32.totalorder %s3202_s18, %s2675_s5  ;;  %p2680_p10 = scmp.lt.s32.totalorder %s3202_s18, %s3254_s1 }
 0x2a0   : > { %p2681_p4 = scmp.lt.s32.totalorder %s2679_s16, %s2675_s5 }
 0x2a1   : > { %p2677_p6 = pnand %p2676_p5, %p2829_p9 }
 0x2a2   : > { %p2682_p13 = por %p2681_p4, %p2680_p10 }
 0x2a3   : > { %p2678_p7 = pneg %p2677_p6 }
 0x2a5   : > { %p2683_p8 = pnand %p2682_p13, %p2678_p7 }
 0x2a7   : > { %2686 = shalt.err (!%p2683_p8)
}
 0x2a8   : > { %s2767_s23 = smov 128  }
 0x2a9   : > { %2550 = dma.vmem_to_hbm [thread:$0]  (%p2829_p9), %s3196_s25, 256, %s3202_s18, %s2393_s9, %s2767_s23, %s2767_s23, %s2755_s29  }
 0x2aa PF: > { %s2423_s24 = sand.u32 1, %s2721_s6   ;;  %p3260_p11 = scmp.ne.s32.totalorder %s3258_s21, 0 }
 0x2ab   : > { %p3261_p12 = scmp.ge.s32.totalorder %s2741_s11, 2  ;;  %s2424_s26 = scalar_lea.sflag [#allocation4], %s2423_s24 }
 0x2ad   : > { %p2557_p0 = pnand %p3261_p12, %p3260_p11 }
 0x2af   : > { %p2558_p1 = pneg %p2557_p0 }
 0x2b1   : > { %2716 = dma.done.wait (%p2558_p1), %s2424_s26, 256  }
 0x2b2   : > { %2718 = vsyncadd (%p2558_p1), %s2424_s26, 4294967040  ;;  %s17_s11 = sadd.s32 1, %s2741_s11   ;;  %s3262_s6 = smov %s2725_s7 }
 0x2b3   : > { %p14_p2 = scmp.ge.s32.totalorder %s17_s11, 4   ;;  %s3263_s7 = smov %s2729_s8 }
 0x2b4   : > { %s3264_s8 = smov %s2834_s20  ;;  %s3265_s9 = smov %s2737_s10 }
 0x2b5   : > { %s3266_s10 = smov %s3268_s14  ;;  %16 = sbr.rel (!%p14_p2) target bundleno = 6 (0x6), region = 69 }
 0x2ba   :  { %2429 = vsyncpa [#allocation3], 1 }
 0x2bb   :  { %2431 = vsyncpa [#allocation3 + $0x1], 1 }
 0x2bc   :  { %2432 = vsyncpa [#allocation4], 1 }
 0x2bd   :  { %2434 = vsyncpa [#allocation4 + $0x1], 1 }

</bundles_post_ra>
